<compile_context>
chip_gen: v7x
topology: tpu7x:2x2x1
jax: 0.10.0
libtpu: 0.0.40
codegen_flags: <defaults>
</compile_context>

<pallas_src>
import functools

import jax
import jax.numpy as jnp
from jax.experimental import pallas as pl
from jax.experimental.pallas import tpu as pltpu


def _vmem_limit_bytes():
    try:
        cap = pltpu.get_tpu_info().vmem_capacity_bytes
    except Exception:
        cap = 64 * 1024 * 1024
    return int(cap * 3 // 4)


# ---------------------------------------------------------------- embedding
def _embed_kernel(x_ref, w_ref, b_ref, o_ref):
    o_ref[...] = (jnp.dot(x_ref[...], w_ref[...],
                          preferred_element_type=jnp.float32) + b_ref[...])


def pallas_embedding(x_pad, w, b, tn):
    n_pad, fin = x_pad.shape
    hp = w.shape[1]
    return pl.pallas_call(
        _embed_kernel,
        out_shape=jax.ShapeDtypeStruct((n_pad, hp), jnp.float32),
        grid_spec=pltpu.PrefetchScalarGridSpec(
            num_scalar_prefetch=0,
            grid=(n_pad // tn,),
            in_specs=[
                pl.BlockSpec((tn, fin), lambda i: (i, 0)),
                pl.BlockSpec((fin, hp), lambda i: (0, 0)),
                pl.BlockSpec((1, hp), lambda i: (0, 0)),
            ],
            out_specs=pl.BlockSpec((tn, hp), lambda i: (i, 0)),
        ),
        compiler_params=pltpu.CompilerParams(
            dimension_semantics=("parallel",),
            vmem_limit_bytes=_vmem_limit_bytes()),
    )(x_pad, w, b)


# ----------------------------------------------------------- E_GCL_RM_Node
def _egcl_kernel(hc_ref, rad_ref, h_ref,
                 w1s_ref, w1t_ref, w1r_ref, b1_ref,
                 w2_ref, b2_ref, w3_ref, b3_ref, w4_ref, b4_ref,
                 out_ref, *, k, cdtype):
    f32 = jnp.float32
    h_f32 = h_ref[...]                     # [tn, hp] f32 (residual + source)
    h_c = h_f32.astype(cdtype)

    w1t = w1t_ref[...]
    w1r = w1r_ref[...]
    w2 = w2_ref[...]
    b2 = b2_ref[...]

    # j-invariant "source" half of the first edge-MLP layer: once per node tile.
    src = jnp.dot(h_c, w1s_ref[...], preferred_element_type=f32) + b1_ref[...]

    # edge_mlp over all k neighbour slots + k-sum aggregation, in-register.
    agg = jnp.zeros_like(src)
    for a in range(k):                     # static unroll (k fused into one step)
        m1 = (jnp.dot(hc_ref[a], w1t, preferred_element_type=f32)
              + rad_ref[a] * w1r + src)
        m1 = m1 * jax.nn.sigmoid(m1)                                   # SiLU
        m2 = jnp.dot(m1.astype(cdtype), w2, preferred_element_type=f32) + b2
        agg = agg + m2 * jax.nn.sigmoid(m2)                            # SiLU

    # node_gate: Linear -> ReLU -> Linear -> Sigmoid, then residual update.
    g = (jnp.dot(agg.astype(cdtype), w3_ref[...], preferred_element_type=f32)
         + b3_ref[...])
    g = jnp.maximum(g, 0.0)
    g = (jnp.dot(g.astype(cdtype), w4_ref[...], preferred_element_type=f32)
         + b4_ref[...])
    gate = jax.nn.sigmoid(g)
    out_ref[...] = h_f32 + gate * agg


def egcl_layer(h_pad, hc, rad, p, tn, cdtype):
    n_pad, hp = h_pad.shape
    k = hc.shape[0]
    full = lambda i: (0, 0)
    kern = functools.partial(_egcl_kernel, k=k, cdtype=cdtype)
    return pl.pallas_call(
        kern,
        out_shape=jax.ShapeDtypeStruct((n_pad, hp), jnp.float32),
        grid_spec=pltpu.PrefetchScalarGridSpec(
            num_scalar_prefetch=0,
            grid=(n_pad // tn,),
            in_specs=[
                pl.BlockSpec((k, tn, hp), lambda i: (0, i, 0)),   # h[col] block
                pl.BlockSpec((k, tn, 1), lambda i: (0, i, 0)),    # radial block
                pl.BlockSpec((tn, hp), lambda i: (i, 0)),         # h (self)
                pl.BlockSpec((hp, hp), full),                     # w1 source rows
                pl.BlockSpec((hp, hp), full),                     # w1 target rows
                pl.BlockSpec((1, hp), full),                      # w1 radial row
                pl.BlockSpec((1, hp), full),                      # b1
                pl.BlockSpec((hp, hp), full),                     # w2
                pl.BlockSpec((1, hp), full),                      # b2
                pl.BlockSpec((hp, hp), full),                     # w3 (gate)
                pl.BlockSpec((1, hp), full),                      # b3
                pl.BlockSpec((hp, hp), full),                     # w4 (gate)
                pl.BlockSpec((1, hp), full),                      # b4
            ],
            out_specs=pl.BlockSpec((tn, hp), lambda i: (i, 0)),
        ),
        compiler_params=pltpu.CompilerParams(
            dimension_semantics=("parallel",),
            vmem_limit_bytes=_vmem_limit_bytes()),
    )(hc, rad, h_pad,
      p["w1s"], p["w1t"], p["w1r"], p["b1"],
      p["w2"], p["b2"], p["w3"], p["b3"], p["w4"], p["b4"])


# ------------------------------------------------------------ full forward
def _pad_to(x, rows, cols):
    return jnp.pad(x, ((0, rows - x.shape[0]), (0, cols - x.shape[1])))


def egnn_forward(params, h, x, row, col, k, tn=256,
                 compute_dtype=jnp.bfloat16):
    h = h.reshape(-1, h.shape[-1]).astype(jnp.float32)
    x = x.reshape(-1, x.shape[-1]).astype(jnp.float32)
    n_tot, in_nf = h.shape
    hidden = params["emb_w"].shape[1]

    # E_GCL_RM_Node.node_model reshapes edge_attr to [B, -1, k, dim]: edges must
    # be grouped per destination node, k consecutive edges each.  Under that
    # layout row == repeat(arange(n_tot), k), so the edge "source" features are
    # each node's own h tile and never need a gather.
    try:
        expect = jnp.repeat(jnp.arange(n_tot, dtype=row.dtype), k)
        row_ok = bool(jnp.all(row == expect))
    except Exception:       # tracing: cannot check; assume documented layout
        row_ok = True
    assert row_ok, "edge list must satisfy row == repeat(arange(n_tot), k)"
    # TODO(synk): arbitrary edge lists would need a gathered-source path, but
    # node_model's view(B, -1, k, d) already forbids them in the reference model.

    # Lane-dense padded hidden size and node tile (multiple of 16 for bf16 tiles).
    hp = pl.cdiv(hidden, 128) * 128
    tn = max(16, (int(tn) // 16) * 16)
    tn = min(tn, pl.cdiv(n_tot, 16) * 16)
    n_pad = pl.cdiv(n_tot, tn) * tn

    # Neighbour index table [k, n_pad] (padded nodes read row 0; sliced off later).
    col_t = col.reshape(n_tot, k).T
    col_t = jnp.pad(col_t, ((0, 0), (0, n_pad - n_tot)))

    # radial = ||x_i - x_j||^2; coords never change in this module, compute once.
    diff = x[row] - x[col]
    radial = jnp.sum(diff * diff, axis=1).reshape(n_tot, k).T
    radial = jnp.pad(radial, ((0, 0), (0, n_pad - n_tot)))[..., None]  # [k,n_pad,1]

    # Embedding (tiled over node rows, output lane-padded to hp).
    emb_w = _pad_to(params["emb_w"], in_nf, hp)
    emb_b = _pad_to(params["emb_b"], 1, hp)
    h_pad = jnp.pad(h, ((0, n_pad - n_tot), (0, 0)))
    h_pad = pallas_embedding(h_pad, emb_w, emb_b, tn)                  # [n_pad, hp]

    # Per-layer padded / casted weights (matmul weights in compute_dtype).
    layers = []
    for p in params["layers"]:
        layers.append(dict(
            w1s=_pad_to(p["w1s"], hp, hp).astype(compute_dtype),
            w1t=_pad_to(p["w1t"], hp, hp).astype(compute_dtype),
            w1r=_pad_to(p["w1r"], 1, hp),
            b1=_pad_to(p["b1"], 1, hp),
            w2=_pad_to(p["w2"], hp, hp).astype(compute_dtype),
            b2=_pad_to(p["b2"], 1, hp),
            w3=_pad_to(p["w3"], hp, hp).astype(compute_dtype),
            b3=_pad_to(p["b3"], 1, hp),
            w4=_pad_to(p["w4"], hp, hp).astype(compute_dtype),
            b4=_pad_to(p["b4"], 1, hp)))

    for p in layers:
        # TODO(synk): gather h[col] in-kernel (scalar-prefetched col table +
        # manual DMA) to avoid this XLA-side [k, n_pad, hp] materialization.
        hc = jnp.take(h_pad, col_t, axis=0).astype(compute_dtype)      # [k,n_pad,hp]
        h_pad = egcl_layer(h_pad, hc, radial, p, tn, compute_dtype)

    # E_GCL_RM_Node.forward never calls coord_model -> coordinates unchanged.
    return h_pad[:n_tot, :hidden], x


# ------------------------------------------------------ pure-JAX reference
def egnn_reference(params, h, x, row, col, k):
    h = h.reshape(-1, h.shape[-1]) @ params["emb_w"] + params["emb_b"]
    x = x.reshape(-1, x.shape[-1])
    hdim = h.shape[-1]
    for p in params["layers"]:
        diff = x[row] - x[col]
        radial = jnp.sum(diff ** 2, axis=1, keepdims=True)
        m1 = h[row] @ p["w1s"] + h[col] @ p["w1t"] + radial * p["w1r"] + p["b1"]
        m1 = jax.nn.silu(m1)
        ef = jax.nn.silu(m1 @ p["w2"] + p["b2"])
        agg = ef.reshape(-1, k, hdim).sum(axis=1)
        gate = jax.nn.sigmoid(
            jnp.maximum(agg @ p["w3"] + p["b3"], 0.0) @ p["w4"] + p["b4"])
        h = h + gate * agg
    return h, x


# ------------------------------------------------------------- parameters
def init_params(key, in_nf, hidden, n_layers):
    def linear(lk, fi, fo):
        kw, kb = jax.random.split(lk)
        bound = 1.0 / (fi ** 0.5)
        w = jax.random.uniform(kw, (fi, fo), jnp.float32, -bound, bound)
        b = jax.random.uniform(kb, (1, fo), jnp.float32, -bound, bound)
        return w, b

    keys = jax.random.split(key, 1 + n_layers)
    emb_w, emb_b = linear(keys[0], in_nf, hidden)
    layers = []
    for i in range(n_layers):
        ks = jax.random.split(keys[1 + i], 4)
        w1, b1 = linear(ks[0], 2 * hidden + 1, hidden)   # edge_mlp Linear 0
        w2, b2 = linear(ks[1], hidden, hidden)           # edge_mlp Linear 2
        w3, b3 = linear(ks[2], hidden, hidden)           # node_gate Linear 0
        w4, b4 = linear(ks[3], hidden, hidden)           # node_gate Linear 2
        layers.append(dict(
            w1s=w1[:hidden], w1t=w1[hidden:2 * hidden], w1r=w1[2 * hidden:],
            b1=b1, w2=w2, b2=b2, w3=w3, b3=b3, w4=w4, b4=b4))
    # NOTE: the unused `layer` (Linear(hidden,1) xavier) and the att_mlp /
    # coord_mlp branches are dead code in this forward pass and are omitted.
    return dict(emb_w=emb_w, emb_b=emb_b, layers=layers)


if __name__ == "__main__":
    B, N, in_nf, hidden, k, n_layers = 2, 8, 16, 32, 4, 4
    n_tot = B * N

    key = jax.random.PRNGKey(0)
    kh, kx, kp = jax.random.split(key, 3)
    h0 = jax.random.normal(kh, (B, N, in_nf), jnp.float32)
    x0 = jax.random.normal(kx, (B, N, 3), jnp.float32)

    # deterministic kNN-style edge list grouped per node:
    # node i -> neighbours (i+1 .. i+k) mod n_tot
    row = jnp.repeat(jnp.arange(n_tot, dtype=jnp.int32), k)
    col = (row + jnp.tile(jnp.arange(1, k + 1, dtype=jnp.int32), n_tot)) % n_tot

    params = init_params(kp, in_nf, hidden, n_layers)
    h_ref, x_ref = egnn_reference(params, h0, x0, row, col, k)

    # f32 path: faithful to the module, tight tolerance.
    h_f32, x_out = egnn_forward(params, h0, x0, row, col, k,
                                compute_dtype=jnp.float32)
    jax.block_until_ready((h_f32, x_out))
    assert jnp.allclose(h_f32, h_ref, atol=1e-4, rtol=1e-4), "h (f32) mismatch"
    assert jnp.allclose(x_out, x_ref, atol=1e-5, rtol=1e-5), "x mismatch"

    # bf16-matmul path (default): halved HBM/VMEM traffic, native MXU rate.
    h_bf16, _ = egnn_forward(params, h0, x0, row, col, k)
    jax.block_until_ready(h_bf16)
    assert jnp.allclose(h_bf16, h_ref, atol=1e-1, rtol=1e-1), "h (bf16) mismatch"

    print("KERNEL_OK")
</pallas_src>

<mosaic_0001>
module attributes {stable_mosaic.version = 11 : i64} {
  func.func @_embed_kernel(%arg0: i32, %arg1: memref<16x16xf32, #tpu.memory_space<vmem>>, %arg2: memref<16x128xf32, #tpu.memory_space<vmem>>, %arg3: memref<1x128xf32, #tpu.memory_space<vmem>>, %arg4: memref<16x128xf32, #tpu.memory_space<vmem>>) attributes {dimension_semantics = [#tpu.dimension_semantics<parallel>], iteration_bounds = array<i64: 1>, scalar_prefetch = 0 : i64, scratch_operands = 0 : i64, tpu.core_type = #tpu.core_type<tc>, window_params = [{transform_indices = @transform_0, window_bounds = array<i64: 16, 16>}, {pipeline_mode = #tpu.pipeline_mode<synchronous>, transform_indices = @transform_1, window_bounds = array<i64: 16, 128>}, {pipeline_mode = #tpu.pipeline_mode<synchronous>, transform_indices = @transform_2, window_bounds = array<i64: 1, 128>}, {transform_indices = @transform_3, window_bounds = array<i64: 16, 128>}]} {
    %c0 = arith.constant 0 : index
    %c0_0 = arith.constant 0 : index
    %0 = vector.load %arg1[%c0, %c0_0] : memref<16x16xf32, #tpu.memory_space<vmem>>, vector<16x16xf32>
    %c0_1 = arith.constant 0 : index
    %c0_2 = arith.constant 0 : index
    %1 = vector.load %arg2[%c0_1, %c0_2] : memref<16x128xf32, #tpu.memory_space<vmem>>, vector<16x128xf32>
    %cst = arith.constant dense<0.000000e+00> : vector<16x128xf32>
    %2 = tpu.matmul %0, %1, %cst {dimension_numbers = #tpu.dot_dimension_numbers<[1], [0], [0], [1], [0, 0, 1, 1], [], []>} : vector<16x16xf32>, vector<16x128xf32>, vector<16x128xf32> -> vector<16x128xf32>
    %c0_3 = arith.constant 0 : index
    %c0_4 = arith.constant 0 : index
    %3 = vector.load %arg3[%c0_3, %c0_4] : memref<1x128xf32, #tpu.memory_space<vmem>>, vector<1x128xf32>
    %4 = vector.broadcast %3 : vector<1x128xf32> to vector<16x128xf32>
    %5 = arith.addf %2, %4 : vector<16x128xf32>
    %c0_5 = arith.constant 0 : index
    %c0_6 = arith.constant 0 : index
    %6 = vector.load %arg4[%c0_5, %c0_6] : memref<16x128xf32, #tpu.memory_space<vmem>>, vector<16x128xf32>
    tpu.vector_store %arg4[%c0_5, %c0_6], %5 {strides = array<i32>} : memref<16x128xf32, #tpu.memory_space<vmem>>, vector<16x128xf32>,
    return
  }
  func.func @transform_0(%arg0: i32) -> (i32, i32) {
    %c0_i32 = arith.constant 0 : i32
    %c0_i32_0 = arith.constant 0 : i32
    return %arg0, %c0_i32 : i32, i32
  }
  func.func @transform_1(%arg0: i32) -> (i32, i32) {
    %c0_i32 = arith.constant 0 : i32
    %c0_i32_0 = arith.constant 0 : i32
    %c0_i32_1 = arith.constant 0 : i32
    return %c0_i32, %c0_i32_0 : i32, i32
  }
  func.func @transform_2(%arg0: i32) -> (i32, i32) {
    %c0_i32 = arith.constant 0 : i32
    %c0_i32_0 = arith.constant 0 : i32
    %c0_i32_1 = arith.constant 0 : i32
    return %c0_i32, %c0_i32_0 : i32, i32
  }
  func.func @transform_3(%arg0: i32) -> (i32, i32) {
    %c0_i32 = arith.constant 0 : i32
    %c0_i32_0 = arith.constant 0 : i32
    return %arg0, %c0_i32 : i32, i32
  }
}

</mosaic_0001>

<bundles_post_ra>
// kernel: tpu_custom_call.1
= control target key start
LH: loop header
LB: loop body
LE: loop exit
PB: predicated region body
PF: predicated region fallthrough
CT: control target
= control target key end

     0   :  { %8 = vsyncpa [#allocation3], 0  ;;  %s324_s0 = inlined_call_operand.hbm [shape: f32[16,16], index: 0, kind: input, shape index: {}]   ;;  %s325_s1 = inlined_call_operand.hbm [shape: f32[16,128], index: 1, kind: input, shape index: {}]   ;;  %s326_s2 = inlined_call_operand.vmem [shape: f32[1,128], index: 2, kind: input, shape index: {}]   ;;  %s327_s3 = inlined_call_operand.hbm [shape: f32[16,128], index: 3, kind: output, shape index: {}]  }
   0x1   :  { %9 = vsyncpa [#allocation6], 0 }
   0x2   :  { %10 = vsyncpa [#allocation4], 0  ;;  %s251_s12 = smov [#allocation2]   ;;  %s179_s16 = scalar_lea.hbm %s324_s0, 256 }
   0x3   :  { %s16_s13 = sshll.u32 %s251_s12, 4  ;;  %p180_p0 = scmp.ne.s32.totalorder %s324_s0, %s179_s16  ;;  %s17_s13 = int_to_ptr.vmem [resolvable:$true] %s16_s13 }
   0x4   :  { %p183_p1 = scmp.lt.u32.totalorder %s179_s16, %s324_s0 }
   0x6   :  { %p185_p2 = pnand %p183_p1, %p180_p0 }
   0x8   :  { %188 = shalt.err (!%p185_p2)
}
   0x9   :  { %s189_s21 = scalar_lea.vmem %s17_s13, 256  ;;  %p194_p4 = scmp.lt.s32.totalorder %s17_s13, %s17_s13 }
   0xa   :  { %p190_p3 = scmp.ne.s32.totalorder %s17_s13, %s189_s21  ;;  %p195_p5 = scmp.lt.s32.totalorder %s189_s21, %s189_s21 }
   0xc   :  { %p196_p6 = por %p195_p5, %p194_p4 }
   0xe   :  { %p197_p7 = pnand %p196_p6, %p190_p3 }
  0x10   :  { %200 = shalt.err (!%p197_p7)
}
  0x11   :  { %s252_s22 = smov 128   ;;  %s253_s23 = smov 8  }
  0x12   :  { %22 = dma.hbm_to_vmem [thread:$0]  %s324_s0, 256, %s17_s13, [#allocation3], %s252_s22, %s252_s22, %s253_s23  }
  0x13   :  { %s254_s26 = smov [#allocation5]   ;;  %s201_s30 = scalar_lea.hbm %s325_s1, 256 }
  0x14   :  { %s28_s27 = sshll.u32 %s254_s26, 4  ;;  %p202_p8 = scmp.ne.s32.totalorder %s325_s1, %s201_s30  ;;  %s29_s27 = int_to_ptr.vmem [resolvable:$true] %s28_s27 }
  0x15   :  { %p205_p9 = scmp.lt.u32.totalorder %s201_s30, %s325_s1 }
  0x17   :  { %p207_p10 = pnand %p205_p9, %p202_p8 }
  0x19   :  { %210 = shalt.err (!%p207_p10)
}
  0x1a   :  { %s211_s8 = scalar_lea.vmem %s29_s27, 256  ;;  %p216_p12 = scmp.lt.s32.totalorder %s29_s27, %s29_s27 }
  0x1b   :  { %p212_p11 = scmp.ne.s32.totalorder %s29_s27, %s211_s8  ;;  %p217_p13 = scmp.lt.s32.totalorder %s211_s8, %s211_s8 }
  0x1d   :  { %p218_p0 = por %p217_p13, %p216_p12 }
  0x1f   :  { %p219_p1 = pnand %p218_p0, %p212_p11 }
  0x21   :  { %222 = shalt.err (!%p219_p1)
}
  0x22   :  { %34 = dma.hbm_to_vmem [thread:$0]  %s325_s1, 256, %s29_s27, [#allocation6], %s252_s22, %s252_s22, %s253_s23  }
  0x23   :  { %245 = dma.done.wait [#allocation3], 256  }
  0x24   :  { %246 = vsyncadd [#allocation3], 4294967040 }
  0x25   :  { %247 = dma.done.wait [#allocation6], 256  }
  0x26   :  { %248 = vsyncadd [#allocation6], 4294967040  ;;  %vm54_vm0 = vcmask 130048   ;;  %v45_v0 = vld [vmem:[#allocation5] sm:$0xff]  ;;  %v46_v1 = vld [vmem:[#allocation5 + $0x8] sm:$0xff]  ;;  %s255_s12 = smov [#allocation7]  }
  0x27   :  { %v43_v2 = vld [vmem:[#allocation2] sm:$0xff]  ;;  %v170_v3 = vpack.c.bf16 %v46_v1, %v45_v0  ;;  %v44_v4 = vld [vmem:[#allocation2 + $0x8] sm:$0xff]  ;;  %s143_s1 = sshll.u32 %s255_s12, 4  ;;  %s144_s1 = int_to_ptr.vmem [resolvable:$true] %s143_s1 }
  0x28   :  { %167 = vmatprep.mubr.msk.f32.mxu0 %vm54_vm0, %v43_v2  ;;  %v156_v5 = vld [vmem:[%s326_s2] ss:$0 sm:$0xff]  ;;  %s223_s13 = scalar_lea.vmem %s144_s1, 256  ;;  %p228_p3 = scmp.lt.s32.totalorder %s144_s1, %s144_s1 }
  0x29   :  { %171 = vmatprep.subr.bf16.mxu0 %v170_v3  ;;  %p224_p2 = scmp.ne.s32.totalorder %s144_s1, %s223_s13  ;;  %p229_p4 = scmp.lt.s32.totalorder %s223_s13, %s223_s13 }
  0x2a   :  { %173 = vmatpush3.bf16.msra.mxu0 %v170_v3 }
  0x2b   :  { %p230_p5 = por %p229_p4, %p228_p3 }
  0x2d   :  { %168 = vmatmul.mubr.msk.f32.vlgmr.msra.gmra.mrb[0].mxu0 %vm54_vm0, %v44_v4  ;;  %p231_p6 = pnand %p230_p5, %p224_p2 }
 0x100   :  { %v169_v6 = vpop.f32.mrb[0].mxu0 }
 0x101   :  { %v133_v7 = vadd.f32 %v169_v6, %v156_v5  ;;  %v127_v8 = vpop.f32.mrb[1].mxu0 }
 0x102   :  { %v128_v9 = vadd.f32 %v156_v5, %v127_v8 }
 0x103   :  { %137 = vst [vmem:[#allocation7 + $0x8] sm:$0xff] %v133_v7 }
 0x104   :  { %136 = vst [vmem:[#allocation7] sm:$0xff] %v128_v9 }
 0x105   :  { %234 = shalt.err (!%p231_p6)
}
 0x106   :  { %s235_s2 = scalar_lea.hbm %s327_s3, 256 }
 0x107   :  { %p236_p7 = scmp.ne.s32.totalorder %s327_s3, %s235_s2  ;;  %p239_p8 = scmp.lt.u32.totalorder %s235_s2, %s327_s3 }
 0x109   :  { %p241_p9 = pnand %p239_p8, %p236_p7 }
 0x10b   :  { %244 = shalt.err (!%p241_p9)
}
 0x10c   :  { %149 = dma.vmem_to_hbm [thread:$0]  %s144_s1, 256, %s327_s3, [#allocation4], %s252_s22, %s252_s22, %s253_s23  }
 0x10d   :  { %249 = dma.done.wait [#allocation4], 256  }
 0x10e   :  { %250 = vsyncadd [#allocation4], 4294967040 }
 0x10f   :  { %153 = vsyncpa [#allocation3], 1 }
 0x110   :  { %154 = vsyncpa [#allocation6], 1 }
 0x111   :  { %155 = vsyncpa [#allocation4], 1 }

</bundles_post_ra>
